<compile_context>
chip_gen: v6e
topology: v6e:2x2x1
jax: 0.10.0
libtpu: 0.0.40
codegen_flags: <defaults>
</compile_context>

<pallas_src>
import jax
import jax.numpy as jnp
from jax import lax
from jax.experimental import pallas as pl
from jax.experimental.pallas import tpu as pltpu


# ---------------------------------------------------------------------------
# Kernel: fn(x) = gain * x + bias, per-row (per (n, c, fold)) gain/bias
# broadcast over the lane axis.
# ---------------------------------------------------------------------------
def _affine_kernel(gain_ref, bias_ref, x_ref, o_ref):
    o_ref[...] = x_ref[...] * gain_ref[...] + bias_ref[...]


def _round_up(x, m):
    return ((x + m - 1) // m) * m


def _sublane_multiple(dtype):
    # sub-32-bit dtypes pack along sublanes: 8 rows f32, 16 bf16, 32 int8/fp8
    return max(8, 32 // jnp.dtype(dtype).itemsize)


def _choose_lane_width(spatial, lane_cap):
    """Largest multiple of 128 that divides `spatial` and is <= lane_cap.
    The remaining factor of `spatial` is folded into the row axis."""
    top = (min(spatial, lane_cap) // 128) * 128
    for lw in range(top, 0, -128):
        if spatial % lw == 0:
            return lw
    # No 128-multiple divisor: keep the full spatial extent on the lane axis;
    # it is zero-padded to a multiple of 128 before the kernel (and sliced).
    return spatial


_X_TILE_BYTES = 4 << 20   # per x-tile budget; 2x(in)+2x(out) ~= 16 MiB
_LANE_CAP = 2048          # lane-axis tile cap (multiple of 128)


def _make_affine_call(rows_p, lanes_p, tr, tl, dtype):
    numel = rows_p * lanes_p
    itemsize = jnp.dtype(dtype).itemsize
    return pl.pallas_call(
        _affine_kernel,
        out_shape=jax.ShapeDtypeStruct((rows_p, lanes_p), dtype),
        grid_spec=pltpu.PrefetchScalarGridSpec(
            num_scalar_prefetch=0,
            grid=(rows_p // tr, lanes_p // tl),
            in_specs=[
                # gain / bias: tiny (tr, 1) blocks, indexed on the row axis only
                pl.BlockSpec((tr, 1), lambda i, j: (i, 0)),
                pl.BlockSpec((tr, 1), lambda i, j: (i, 0)),
                # x: lane-dense (tr, tl) tiles, double-buffered by the pipeline
                pl.BlockSpec((tr, tl), lambda i, j: (i, j)),
            ],
            out_specs=pl.BlockSpec((tr, tl), lambda i, j: (i, j)),
        ),
        compiler_params=pltpu.CompilerParams(
            # both grid axes independent -> megacore sharding on v7x
            dimension_semantics=("parallel", "parallel"),
            # 32 MiB scoped VMEM: above v5e's 16 MiB default, half of v7x's
            # 64 MiB physical (leaves headroom for Mosaic internal scratch).
            vmem_limit_bytes=32 << 20,
        ),
        cost_estimate=pl.CostEstimate(
            flops=2 * numel,
            transcendentals=0,
            bytes_accessed=2 * numel * itemsize,
        ),
    )


@jax.jit
def random_apply(x, gain, bias, p, seed):
    """x: (N, C, H, W); gain/bias: (C,); p: scalar probability; seed: int.
    With probability p returns gain[c]*x + bias[c], else x unchanged."""
    N, C, H, W = x.shape
    dtype = x.dtype
    itemsize = jnp.dtype(dtype).itemsize
    spatial = H * W

    # ---- static tiling plan (trace-time; shapes are static under jit) ----
    lane_w = _choose_lane_width(spatial, _LANE_CAP)
    fold = spatial // lane_w
    rows = N * C * fold

    sub = _sublane_multiple(dtype)
    tl = min(_round_up(lane_w, 128), _LANE_CAP)
    tr_budget = max(sub, (_X_TILE_BYTES // (tl * itemsize)) // sub * sub)
    tr = min(_round_up(rows, sub), tr_budget)
    rows_p = _round_up(rows, tr)
    lanes_p = _round_up(lane_w, tl)
    needs_pad = (rows_p != rows) or (lanes_p != lane_w)

    affine = _make_affine_call(rows_p, lanes_p, tr, tl, dtype)

    def apply_branch(xin):
        # Lane-dense 2-D slab: row r = ((n*C + c)*fold + k), lanes = spatial/fold.
        x2 = xin.reshape(rows, lane_w)
        g2 = jnp.tile(jnp.repeat(gain.astype(dtype), fold), N).reshape(rows, 1)
        b2 = jnp.tile(jnp.repeat(bias.astype(dtype), fold), N).reshape(rows, 1)
        if needs_pad:
            # TODO(synk): switch to a cdiv grid with masked boundary blocks to
            # avoid this extra pad copy for non-(8,128)-friendly shapes.
            x2 = jnp.pad(x2, ((0, rows_p - rows), (0, lanes_p - lane_w)))
            g2 = jnp.pad(g2, ((0, rows_p - rows), (0, 0)))
            b2 = jnp.pad(b2, ((0, rows_p - rows), (0, 0)))
        y2 = affine(g2, b2, x2)
        if needs_pad:
            y2 = y2[:rows, :lane_w]
        return y2.reshape(N, C, H, W)

    # PyTorch: `if random.random() > p: return x` -> apply fn when u <= p.
    # (u can be exactly 0.0 with prob ~2^-24, so p=0 is identity only w.h.p.;
    #  torchvision uses the same comparison.)
    u = jax.random.uniform(jax.random.PRNGKey(seed), (), dtype=jnp.float32)
    apply_fn = u <= jnp.asarray(p, jnp.float32)

    # Identity branch costs zero HBM traffic; fn-branch streams the kernel.
    return lax.cond(apply_fn, apply_branch, lambda xin: xin, x)


if __name__ == "__main__":
    key = jax.random.PRNGKey(0)
    N, C, H, W = 2, 4, 16, 16
    x = jax.random.normal(key, (N, C, H, W), dtype=jnp.float32)

    # deterministic parameters for fn (per-channel affine "jitter")
    gain = 1.0 + 0.1 * jnp.arange(C, dtype=jnp.float32)
    bias = 0.01 * jnp.arange(C, dtype=jnp.float32)

    # nominal call (p = 0.5)
    out = random_apply(x, gain, bias, 0.5, 1234)
    jax.block_until_ready(out)

    # deterministic extremes of p (same cached executable; p/seed are traced)
    out_never = random_apply(x, gain, bias, 0.0, 1234)    # identity (w.h.p.)
    out_always = random_apply(x, gain, bias, 1.0, 1234)   # always fn(x)
    jax.block_until_ready(out_never)
    jax.block_until_ready(out_always)

    ref_fn = x * gain.reshape(1, C, 1, 1) + bias.reshape(1, C, 1, 1)
    assert jnp.allclose(out_never, x, atol=1e-6), "identity branch mismatch"
    assert jnp.allclose(out_always, ref_fn, atol=1e-5), "fn branch mismatch"
    # nominal output must equal one of the two branches exactly
    assert (jnp.allclose(out, x, atol=1e-6)
            or jnp.allclose(out, ref_fn, atol=1e-5)), "output is neither branch"

    print("KERNEL_OK")
</pallas_src>

<mosaic_0001>
module attributes {stable_mosaic.version = 11 : i64} {
  func.func @_affine_kernel(%arg0: i32, %arg1: i32, %arg2: memref<8x1xf32, #tpu.memory_space<vmem>>, %arg3: memref<8x1xf32, #tpu.memory_space<vmem>>, %arg4: memref<8x256xf32, #tpu.memory_space<vmem>>, %arg5: memref<8x256xf32, #tpu.memory_space<vmem>>) attributes {dimension_semantics = [#tpu.dimension_semantics<parallel>, #tpu.dimension_semantics<parallel>], iteration_bounds = array<i64: 1, 1>, scalar_prefetch = 0 : i64, scratch_operands = 0 : i64, tpu.core_type = #tpu.core_type<tc>, window_params = [{transform_indices = @transform_0, window_bounds = array<i64: 8, 1>}, {transform_indices = @transform_1, window_bounds = array<i64: 8, 1>}, {transform_indices = @transform_2, window_bounds = array<i64: 8, 256>}, {transform_indices = @transform_3, window_bounds = array<i64: 8, 256>}]} {
    %c0 = arith.constant 0 : index
    %c0_0 = arith.constant 0 : index
    %0 = vector.load %arg4[%c0, %c0_0] : memref<8x256xf32, #tpu.memory_space<vmem>>, vector<8x256xf32>
    %c0_1 = arith.constant 0 : index
    %c0_2 = arith.constant 0 : index
    %1 = vector.load %arg2[%c0_1, %c0_2] : memref<8x1xf32, #tpu.memory_space<vmem>>, vector<8x1xf32>
    %2 = vector.broadcast %1 : vector<8x1xf32> to vector<8x256xf32>
    %3 = arith.mulf %0, %2 : vector<8x256xf32>
    %c0_3 = arith.constant 0 : index
    %c0_4 = arith.constant 0 : index
    %4 = vector.load %arg3[%c0_3, %c0_4] : memref<8x1xf32, #tpu.memory_space<vmem>>, vector<8x1xf32>
    %5 = vector.broadcast %4 : vector<8x1xf32> to vector<8x256xf32>
    %6 = arith.addf %3, %5 : vector<8x256xf32>
    %c0_5 = arith.constant 0 : index
    %c0_6 = arith.constant 0 : index
    %7 = vector.load %arg5[%c0_5, %c0_6] : memref<8x256xf32, #tpu.memory_space<vmem>>, vector<8x256xf32>
    tpu.vector_store %arg5[%c0_5, %c0_6], %6 {strides = array<i32>} : memref<8x256xf32, #tpu.memory_space<vmem>>, vector<8x256xf32>,
    return
  }
  func.func @transform_0(%arg0: i32, %arg1: i32) -> (i32, i32) {
    %c0_i32 = arith.constant 0 : i32
    %c0_i32_0 = arith.constant 0 : i32
    return %arg0, %c0_i32 : i32, i32
  }
  func.func @transform_1(%arg0: i32, %arg1: i32) -> (i32, i32) {
    %c0_i32 = arith.constant 0 : i32
    %c0_i32_0 = arith.constant 0 : i32
    return %arg0, %c0_i32 : i32, i32
  }
  func.func @transform_2(%arg0: i32, %arg1: i32) -> (i32, i32) {
    %c0_i32 = arith.constant 0 : i32
    return %arg0, %arg1 : i32, i32
  }
  func.func @transform_3(%arg0: i32, %arg1: i32) -> (i32, i32) {
    %c0_i32 = arith.constant 0 : i32
    return %arg0, %arg1 : i32, i32
  }
}

</mosaic_0001>

<bundles_post_ra>
// kernel: tile.1
= control target key start
LH: loop header
LB: loop body
LE: loop exit
PB: predicated region body
PF: predicated region fallthrough
CT: control target
= control target key end

     0   :  { %s35_s8 = smov 125   ;;  %vm8_vm0 = vcmask 7168   ;;  %s36_s11 = smov 126   ;;  %s62_s0 = inlined_call_operand.vmem [shape: f32[2,4], index: 0, kind: input, shape index: {}]   ;;  %s63_s1 = inlined_call_operand.vmem [shape: f32[8,1], index: 1, kind: output, shape index: {}]  }
   0x1   :  { %v5_v0 = vld [vmem:[%s62_s0] sm:$0x3]  ;;  %s34_s0 = smov 127  }
   0x2   :  { %6 = vst [vmem:[#allocation0] sm:$0x3] %v5_v0 }
   0x9   :  { %v10_v1 = vld [vmem:[#allocation0] sm:$0x3]  }
   0xa   :  { %v22_v2 = vld [vmem:[#allocation0] sm:$0x3]   ;;  %11 = vrot.lane.b32.xlu0 %v10_v1, %s34_s0 }
   0xb   :  { %23 = vrot.lane.b32.xlu1 %v22_v2, %s35_s8  ;;  %v7_v3 = vld [vmem:[#allocation0] sm:$0x3]  }
   0xc   :  { %v16_v4 = vld [vmem:[#allocation0] sm:$0x3]   ;;  %9 = vst.msk [vmem:[%s63_s1] ss:$4 sm:$0x3] %vm8_vm0, %v7_v3  }
   0xe   :  { %17 = vrot.lane.b32.xlu0 %v16_v4, %s36_s11 }
  0x7c   :  { %v12_v5 = vpop.permute.xlu0 %11  }
  0x7d   :  { %v24_v6 = vpop.permute.xlu1 %23   ;;  %28 = vst.msk [vmem:[%s63_s1 + $0x1] ss:$4 sm:$0x3] %vm8_vm0, %v12_v5  }
  0x7e   :  { %30 = vst.msk [vmem:[%s63_s1 + $0x3] ss:$4 sm:$0x3] %vm8_vm0, %v24_v6  }
  0x80   :  { %v18_v7 = vpop.permute.xlu0 %17  }
  0x81   :  { %29 = vst.msk [vmem:[%s63_s1 + $0x2] ss:$4 sm:$0x3] %vm8_vm0, %v18_v7  }

// kernel: tile.10
= control target key start
LH: loop header
LB: loop body
LE: loop exit
PB: predicated region body
PF: predicated region fallthrough
CT: control target
= control target key end

     0   :  { %s22_s0 = inlined_call_operand.vmem [shape: f32[4], index: 0, kind: input, shape index: {}]   ;;  %s23_s1 = inlined_call_operand.vmem [shape: f32[2,4], index: 1, kind: output, shape index: {}]  }
   0x1   :  { %v4_v0 = vld [vmem:[%s22_s0] ss:$0 sm:$0xff] }
   0x2   :  { %5 = vst [vmem:[%s23_s1] sm:$0x3] %v4_v0 }

// kernel: branch_1_fun.1
= control target key start
LH: loop header
LB: loop body
LE: loop exit
PB: predicated region body
PF: predicated region fallthrough
CT: control target
= control target key end

     0   :  { %v40_v0 = vmov 0   ;;  %s79_s0 = inlined_call_operand.vmem [shape: f32[8,1], index: 0, kind: input, shape index: {}]   ;;  %s80_s1 = inlined_call_operand.vmem [shape: f32[8,1], index: 1, kind: input, shape index: {}]   ;;  %s81_s2 = inlined_call_operand.vmem [shape: f32[8,256], index: 2, kind: input, shape index: {}]   ;;  %s82_s3 = inlined_call_operand.vmem [shape: f32[8,256], index: 3, kind: output, shape index: {}]  }
   0x1   :  { %39 = vset.pattern.permute.xlu0 %v40_v0  ;;  %v16_v1 = vld [vmem:[%s79_s0] sm:$0xff]  ;;  %v15_v4 = vld [vmem:[%s81_s2 + $0x8] sm:$0xff] }
   0x2   :  { %19 = vperm.xlu0 %39, %v16_v1   ;;  %v24_v2 = vld [vmem:[%s80_s1] sm:$0xff] }
   0x3   :  { %v14_v3 = vld [vmem:[%s81_s2] sm:$0xff] }
   0x6   :  { %27 = vperm.xlu0 %39, %v24_v2  }
  0x7d   :  { %v20_v5 = vpop.permute.xlu0 %19 }
  0x7e   :  { %v22_v6 = vmul.f32 %v20_v5, %v14_v3  ;;  %v23_v7 = vmul.f32 %v20_v5, %v15_v4 }
  0x81   :  { %v28_v8 = vpop.permute.xlu0 %27 }
  0x82   :  { %v30_v9 = vadd.f32 %v28_v8, %v22_v6  ;;  %v31_v10 = vadd.f32 %v28_v8, %v23_v7 }
  0x84   :  { %32 = vst [vmem:[%s82_s3] sm:$0xff] %v30_v9  ;;  %33 = vst [vmem:[%s82_s3 + $0x8] sm:$0xff] %v31_v10 }

</bundles_post_ra>
